<compile_context>
chip_gen: v6e
topology: v6e:2x2x1
jax: 0.10.0
libtpu: 0.0.40
codegen_flags: <defaults>
</compile_context>

<pallas_src>
import functools

import jax
import jax.numpy as jnp
import numpy as np
from jax import lax
from jax.experimental import pallas as pl
from jax.experimental.pallas import tpu as pltpu


def _fusion_down_kernel(x_ref, w_ref, p_ref, q_ref, g_ref, beta_ref, o_ref):
    # x_ref   : (C_in+1, B*L)    matmul dtype; last row is all-ones (bias row)
    # w_ref   : (C_out, C_in+1)  matmul dtype; last column is the conv bias
    # p_ref   : (B*L, B*50)      matmul dtype; block-diag avg-pool matrix (1/C_out baked in)
    # q_ref   : (B*50, B*50)     f32; per-sample block mask with 1/(C_out*50) baked in
    # g_ref   : (C_out, B*50)    f32; LN gamma, tiled across the batch
    # beta_ref: (C_out, B*50)    f32; LN beta,  tiled across the batch
    # o_ref   : (C_out, B*50)    f32

    # Conv1d(kernel_size=1) + bias for every batch element in one MXU matmul.
    y = jnp.dot(w_ref[...], x_ref[...], preferred_element_type=jnp.float32)  # (C_out, B*L)

    # avg_pool1d(kernel=stride=C_out) as a matmul with the block-diagonal pool matrix.
    pooled = jnp.dot(y.astype(p_ref.dtype), p_ref[...],
                     preferred_element_type=jnp.float32)                     # (C_out, B*50)

    # One-pass LayerNorm statistics: sum and sum-of-squares issued from the same data.
    col_s = jnp.sum(pooled, axis=0, keepdims=True)             # (1, B*50)  sublane reduce
    col_ss = jnp.sum(pooled * pooled, axis=0, keepdims=True)   # (1, B*50)
    # Broadcast per-sample totals back to each sample's lanes (Q has 1/n baked in).
    mean = jnp.dot(col_s, q_ref[...], preferred_element_type=jnp.float32)    # (1, B*50)
    mean_sq = jnp.dot(col_ss, q_ref[...], preferred_element_type=jnp.float32)
    var = mean_sq - mean * mean                                # biased variance (PyTorch LN)
    scale = lax.rsqrt(var + 1e-5) * g_ref[...]                 # fused gamma * inv_std
    o_ref[...] = ((pooled - mean) * scale + beta_ref[...]).astype(o_ref.dtype)


@functools.lru_cache(maxsize=None)
def _fusion_down_constants(B, C_in, L, C_out, L_out, mm_dtype):
    """Host-built constant operands, cached so they are not rebuilt on every call."""
    # Per-sample avg-pool matrix (L, L_out): column t averages window [t*C_out, (t+1)*C_out).
    # (l // C_out == t) automatically drops any non-divisible tail, like F.avg_pool1d.)
    l_idx = np.arange(L)[:, None]
    t_idx = np.arange(L_out)[None, :]
    p_one = ((l_idx // C_out) == t_idx).astype(np.float32) / float(C_out)
    # Block-diagonal over the batch: (B*L, B*L_out).
    p_full = np.kron(np.eye(B, dtype=np.float32), p_one)
    # Per-sample LN block mask with 1/(C_out*L_out) baked in: (B*L_out, B*L_out).
    sample_id = np.arange(B * L_out) // L_out
    q = (sample_id[:, None] == sample_id[None, :]).astype(np.float32)
    q /= float(C_out * L_out)
    return jnp.asarray(p_full, dtype=mm_dtype), jnp.asarray(q, dtype=jnp.float32)


def fusion_down_block(x, w, b, gamma, beta, *, use_bf16=True):
    """Fused Conv1d(k=1) + avg_pool1d(C_out) + LayerNorm([C_out, 50]).

    x: (B, C_in, L); w: (C_out, C_in); b: (C_out,); gamma/beta: (C_out, 50).
    Returns (B, C_out, 50) float32.
    """
    B, C_in, L = x.shape
    C_out = w.shape[0]
    L_out = L // C_out
    assert L_out == 50, "LayerNorm([C_out, 50]) requires L // C_out == 50"
    BL, BLo = B * L, B * L_out
    mm_dtype = jnp.bfloat16 if use_bf16 else jnp.float32

    # Wrapper-side layout prep (all tiny): x -> (C_in, B*L) with an appended ones row so
    # the conv bias rides along inside the single conv matmul.
    x2 = jnp.transpose(x.astype(jnp.float32), (1, 0, 2)).reshape(C_in, BL)
    x_aug = jnp.concatenate([x2, jnp.ones((1, BL), jnp.float32)], axis=0).astype(mm_dtype)
    w_aug = jnp.concatenate(
        [w.astype(jnp.float32), b.astype(jnp.float32)[:, None]], axis=1).astype(mm_dtype)

    p_full, q_mask = _fusion_down_constants(B, C_in, L, C_out, L_out, mm_dtype)
    gamma_t = jnp.tile(gamma.astype(jnp.float32), (1, B))   # (C_out, B*L_out)
    beta_t = jnp.tile(beta.astype(jnp.float32), (1, B))

    K = C_in + 1
    # Advisory cost: this launch is tiny — let XLA overlap it with neighbouring ops.
    flops = (2 * C_out * K * BL + 2 * C_out * BL * BLo
             + 2 * 2 * BLo * BLo + 10 * C_out * BLo)
    bytes_accessed = (
        x_aug.size * x_aug.dtype.itemsize + w_aug.size * w_aug.dtype.itemsize
        + p_full.size * p_full.dtype.itemsize + q_mask.size * 4
        + 2 * C_out * BLo * 4        # gamma + beta
        + C_out * BLo * 4)           # output
    cost = pl.CostEstimate(flops=int(flops), transcendentals=int(BLo),
                           bytes_accessed=int(bytes_accessed))

    # Single grid step: the whole working set (<1 MB) fits VMEM on all generations, so
    # every block is the full array and the writeback is one lane-dense slab.
    grid_spec = pltpu.PrefetchScalarGridSpec(
        num_scalar_prefetch=0,
        grid=(1,),
        in_specs=[
            pl.BlockSpec((K, BL), lambda i: (0, 0)),        # x (augmented)
            pl.BlockSpec((C_out, K), lambda i: (0, 0)),     # conv weight (augmented)
            pl.BlockSpec((BL, BLo), lambda i: (0, 0)),      # pooling matrix
            pl.BlockSpec((BLo, BLo), lambda i: (0, 0)),     # LN per-sample mask
            pl.BlockSpec((C_out, BLo), lambda i: (0, 0)),   # gamma (batch-tiled)
            pl.BlockSpec((C_out, BLo), lambda i: (0, 0)),   # beta  (batch-tiled)
        ],
        out_specs=pl.BlockSpec((C_out, BLo), lambda i: (0, 0)),
    )

    out2d = pl.pallas_call(
        _fusion_down_kernel,
        out_shape=jax.ShapeDtypeStruct((C_out, BLo), jnp.float32),
        grid_spec=grid_spec,
        compiler_params=pltpu.CompilerParams(dimension_semantics=("arbitrary",)),
        cost_estimate=cost,
    )(x_aug, w_aug, p_full, q_mask, gamma_t, beta_t)

    # (C_out, B*50) -> (B, C_out, 50)
    return out2d.reshape(C_out, B, L_out).transpose(1, 0, 2)


def fusion_down_block_ref(x, w, b, gamma, beta):
    """Pure-JAX reference mirroring the PyTorch forward."""
    B, C_in, L = x.shape
    C_out = w.shape[0]
    y = jnp.einsum("oc,bcl->bol", w, x) + b[None, :, None]          # Conv1d k=1
    L_out = L // C_out
    pooled = y[:, :, : L_out * C_out].reshape(B, C_out, L_out, C_out).mean(-1)
    mean = pooled.mean(axis=(1, 2), keepdims=True)
    var = ((pooled - mean) ** 2).mean(axis=(1, 2), keepdims=True)
    return (pooled - mean) / jnp.sqrt(var + 1e-5) * gamma[None] + beta[None]


if __name__ == "__main__":
    # Small shapes consistent with the module: LayerNorm([C_out, 50]) forces L = 50 * C_out.
    B, C_in, C_out = 2, 8, 4
    L = 50 * C_out  # 200

    key = jax.random.PRNGKey(0)
    kx, kw, kb, kg, kbe = jax.random.split(key, 5)

    x = jax.random.normal(kx, (B, C_in, L), dtype=jnp.float32)
    bound = 1.0 / (C_in ** 0.5)
    w = jax.random.uniform(kw, (C_out, C_in), minval=-bound, maxval=bound, dtype=jnp.float32)
    b = jax.random.uniform(kb, (C_out,), minval=-bound, maxval=bound, dtype=jnp.float32)
    gamma = jnp.ones((C_out, 50), jnp.float32) + 0.01 * jax.random.normal(kg, (C_out, 50))
    beta = 0.01 * jax.random.normal(kbe, (C_out, 50), dtype=jnp.float32)

    fn = jax.jit(fusion_down_block, static_argnames=("use_bf16",))
    ref = fusion_down_block_ref(x, w, b, gamma, beta)

    # Exact-semantics check with f32 MXU operands (tight tolerance).
    out_f32 = jax.block_until_ready(fn(x, w, b, gamma, beta, use_bf16=False))
    assert out_f32.shape == (B, C_out, 50)
    assert jnp.allclose(out_f32, ref, atol=1e-4, rtol=1e-4)

    # Fast path: bf16 MXU operands with f32 accumulation / LN (looser tolerance).
    out_bf16 = jax.block_until_ready(fn(x, w, b, gamma, beta, use_bf16=True))
    assert out_bf16.shape == (B, C_out, 50)
    assert jnp.allclose(out_bf16, ref, atol=5e-2, rtol=5e-2)

    print("KERNEL_OK")
</pallas_src>

<mosaic_0001>
module attributes {stable_mosaic.version = 11 : i64} {
  func.func @_fusion_down_kernel(%arg0: i32, %arg1: memref<9x400xf32, #tpu.memory_space<vmem>>, %arg2: memref<4x9xf32, #tpu.memory_space<vmem>>, %arg3: memref<400x100xf32, #tpu.memory_space<vmem>>, %arg4: memref<100x100xf32, #tpu.memory_space<vmem>>, %arg5: memref<4x100xf32, #tpu.memory_space<vmem>>, %arg6: memref<4x100xf32, #tpu.memory_space<vmem>>, %arg7: memref<4x100xf32, #tpu.memory_space<vmem>>) attributes {dimension_semantics = [#tpu.dimension_semantics<arbitrary>], iteration_bounds = array<i64: 1>, scalar_prefetch = 0 : i64, scratch_operands = 0 : i64, tpu.core_type = #tpu.core_type<tc>, window_params = [{pipeline_mode = #tpu.pipeline_mode<synchronous>, transform_indices = @transform_0, window_bounds = array<i64: 9, 400>}, {pipeline_mode = #tpu.pipeline_mode<synchronous>, transform_indices = @transform_1, window_bounds = array<i64: 4, 9>}, {pipeline_mode = #tpu.pipeline_mode<synchronous>, transform_indices = @transform_2, window_bounds = array<i64: 400, 100>}, {pipeline_mode = #tpu.pipeline_mode<synchronous>, transform_indices = @transform_3, window_bounds = array<i64: 100, 100>}, {pipeline_mode = #tpu.pipeline_mode<synchronous>, transform_indices = @transform_4, window_bounds = array<i64: 4, 100>}, {pipeline_mode = #tpu.pipeline_mode<synchronous>, transform_indices = @transform_5, window_bounds = array<i64: 4, 100>}, {pipeline_mode = #tpu.pipeline_mode<synchronous>, transform_indices = @transform_6, window_bounds = array<i64: 4, 100>}]} {
    %c0 = arith.constant 0 : index
    %c0_0 = arith.constant 0 : index
    %0 = vector.load %arg2[%c0, %c0_0] : memref<4x9xf32, #tpu.memory_space<vmem>>, vector<4x9xf32>
    %c0_1 = arith.constant 0 : index
    %c0_2 = arith.constant 0 : index
    %1 = vector.load %arg1[%c0_1, %c0_2] : memref<9x400xf32, #tpu.memory_space<vmem>>, vector<9x400xf32>
    %cst = arith.constant dense<0.000000e+00> : vector<4x400xf32>
    %2 = tpu.matmul %0, %1, %cst {dimension_numbers = #tpu.dot_dimension_numbers<[1], [0], [0], [1], [0, 0, 1, 1], [], []>} : vector<4x9xf32>, vector<9x400xf32>, vector<4x400xf32> -> vector<4x400xf32>
    %c0_3 = arith.constant 0 : index
    %c0_4 = arith.constant 0 : index
    %3 = vector.load %arg3[%c0_3, %c0_4] : memref<400x100xf32, #tpu.memory_space<vmem>>, vector<400x100xf32>
    %cst_5 = arith.constant dense<0.000000e+00> : vector<4x100xf32>
    %4 = tpu.matmul %2, %3, %cst_5 {dimension_numbers = #tpu.dot_dimension_numbers<[1], [0], [0], [1], [0, 0, 1, 1], [], []>} : vector<4x400xf32>, vector<400x100xf32>, vector<4x100xf32> -> vector<4x100xf32>
    %cst_6 = arith.constant dense<0.000000e+00> : vector<100xf32>
    %5 = vector.multi_reduction <add>, %4, %cst_6 [0] : vector<4x100xf32> to vector<100xf32>
    %6 = vector.shape_cast %5 : vector<100xf32> to vector<1x100xf32>
    %7 = arith.mulf %4, %4 : vector<4x100xf32>
    %cst_7 = arith.constant dense<0.000000e+00> : vector<100xf32>
    %8 = vector.multi_reduction <add>, %7, %cst_7 [0] : vector<4x100xf32> to vector<100xf32>
    %9 = vector.shape_cast %8 : vector<100xf32> to vector<1x100xf32>
    %c0_8 = arith.constant 0 : index
    %c0_9 = arith.constant 0 : index
    %10 = vector.load %arg4[%c0_8, %c0_9] : memref<100x100xf32, #tpu.memory_space<vmem>>, vector<100x100xf32>
    %cst_10 = arith.constant dense<0.000000e+00> : vector<1x100xf32>
    %11 = tpu.matmul %6, %10, %cst_10 {dimension_numbers = #tpu.dot_dimension_numbers<[1], [0], [0], [1], [0, 0, 1, 1], [], []>} : vector<1x100xf32>, vector<100x100xf32>, vector<1x100xf32> -> vector<1x100xf32>
    %c0_11 = arith.constant 0 : index
    %c0_12 = arith.constant 0 : index
    %12 = vector.load %arg4[%c0_11, %c0_12] : memref<100x100xf32, #tpu.memory_space<vmem>>, vector<100x100xf32>
    %cst_13 = arith.constant dense<0.000000e+00> : vector<1x100xf32>
    %13 = tpu.matmul %9, %12, %cst_13 {dimension_numbers = #tpu.dot_dimension_numbers<[1], [0], [0], [1], [0, 0, 1, 1], [], []>} : vector<1x100xf32>, vector<100x100xf32>, vector<1x100xf32> -> vector<1x100xf32>
    %14 = arith.mulf %11, %11 : vector<1x100xf32>
    %15 = arith.subf %13, %14 : vector<1x100xf32>
    %cst_14 = arith.constant 9.99999974E-6 : f32
    %16 = vector.broadcast %cst_14 : f32 to vector<1x100xf32>
    %17 = arith.addf %15, %16 : vector<1x100xf32>
    %18 = math.rsqrt %17 : vector<1x100xf32>
    %c0_15 = arith.constant 0 : index
    %c0_16 = arith.constant 0 : index
    %19 = vector.load %arg5[%c0_15, %c0_16] : memref<4x100xf32, #tpu.memory_space<vmem>>, vector<4x100xf32>
    %20 = vector.broadcast %18 : vector<1x100xf32> to vector<4x100xf32>
    %21 = arith.mulf %20, %19 : vector<4x100xf32>
    %22 = vector.broadcast %11 : vector<1x100xf32> to vector<4x100xf32>
    %23 = arith.subf %4, %22 : vector<4x100xf32>
    %24 = arith.mulf %23, %21 : vector<4x100xf32>
    %c0_17 = arith.constant 0 : index
    %c0_18 = arith.constant 0 : index
    %25 = vector.load %arg6[%c0_17, %c0_18] : memref<4x100xf32, #tpu.memory_space<vmem>>, vector<4x100xf32>
    %26 = arith.addf %24, %25 : vector<4x100xf32>
    %c0_19 = arith.constant 0 : index
    %c0_20 = arith.constant 0 : index
    %27 = vector.load %arg7[%c0_19, %c0_20] : memref<4x100xf32, #tpu.memory_space<vmem>>, vector<4x100xf32>
    tpu.vector_store %arg7[%c0_19, %c0_20], %26 {strides = array<i32>} : memref<4x100xf32, #tpu.memory_space<vmem>>, vector<4x100xf32>,
    return
  }
  func.func @transform_0(%arg0: i32) -> (i32, i32) {
    %c0_i32 = arith.constant 0 : i32
    %c0_i32_0 = arith.constant 0 : i32
    %c0_i32_1 = arith.constant 0 : i32
    return %c0_i32, %c0_i32_0 : i32, i32
  }
  func.func @transform_1(%arg0: i32) -> (i32, i32) {
    %c0_i32 = arith.constant 0 : i32
    %c0_i32_0 = arith.constant 0 : i32
    %c0_i32_1 = arith.constant 0 : i32
    return %c0_i32, %c0_i32_0 : i32, i32
  }
  func.func @transform_2(%arg0: i32) -> (i32, i32) {
    %c0_i32 = arith.constant 0 : i32
    %c0_i32_0 = arith.constant 0 : i32
    %c0_i32_1 = arith.constant 0 : i32
    return %c0_i32, %c0_i32_0 : i32, i32
  }
  func.func @transform_3(%arg0: i32) -> (i32, i32) {
    %c0_i32 = arith.constant 0 : i32
    %c0_i32_0 = arith.constant 0 : i32
    %c0_i32_1 = arith.constant 0 : i32
    return %c0_i32, %c0_i32_0 : i32, i32
  }
  func.func @transform_4(%arg0: i32) -> (i32, i32) {
    %c0_i32 = arith.constant 0 : i32
    %c0_i32_0 = arith.constant 0 : i32
    %c0_i32_1 = arith.constant 0 : i32
    return %c0_i32, %c0_i32_0 : i32, i32
  }
  func.func @transform_5(%arg0: i32) -> (i32, i32) {
    %c0_i32 = arith.constant 0 : i32
    %c0_i32_0 = arith.constant 0 : i32
    %c0_i32_1 = arith.constant 0 : i32
    return %c0_i32, %c0_i32_0 : i32, i32
  }
  func.func @transform_6(%arg0: i32) -> (i32, i32) {
    %c0_i32 = arith.constant 0 : i32
    %c0_i32_0 = arith.constant 0 : i32
    %c0_i32_1 = arith.constant 0 : i32
    return %c0_i32, %c0_i32_0 : i32, i32
  }
}

</mosaic_0001>

<bundles_post_ra>
// kernel: tile.14
= control target key start
LH: loop header
LB: loop body
LE: loop exit
PB: predicated region body
PF: predicated region fallthrough
CT: control target
= control target key end

     0   :  { %vm22_vm0 = vcmask 408576   ;;  %vm28_vm1 = vcmask 818576   ;;  %s70_s0 = inlined_call_operand.vmem [shape: f32[4,2,50], index: 0, kind: input, shape index: {}]   ;;  %s71_s1 = inlined_call_operand.vmem [shape: f32[4,100], index: 1, kind: output, shape index: {}]  }
   0x1   :  { %v40_v0 = vld [vmem:[%s70_s0 + $0x6] sm:$0x3]  ;;  %v41_v1 = vld [vmem:[%s70_s0 + $0x4] sm:$0x3]  ;;  %v42_v2 = vld [vmem:[%s70_s0 + $0x2] sm:$0x3] }
   0x2   :  { %9 = vst [vmem:[#allocation1 + $0x18] sm:$0x3] %v40_v0  ;;  %14 = vst [vmem:[#allocation1 + $0x10] sm:$0x3] %v41_v1  ;;  %v19_v3 = vld [vmem:[%s70_s0] sm:$0x3] }
   0x3   :  { %18 = vst [vmem:[#allocation1 + $0x8] sm:$0x3] %v42_v2  ;;  %20 = vst [vmem:[#allocation1] sm:$0x3] %v19_v3  ;;  %s44_s0 = smov 50  }
   0xa   :  { %v25_v4 = vld [vmem:[#allocation1 + $0x1] ss:$8 sm:$0xf]   ;;  %v21_v5 = vld [vmem:[#allocation1] ss:$8 sm:$0xf]  }
   0xb   :  { %26 = vrot.lane.b32.xlu0 %v25_v4, %s44_s0  ;;  %23 = vst.msk [vmem:[#allocation0] sm:$0xf] %vm22_vm0, %v21_v5  }
  0x7d   :  { %v27_v6 = vpop.permute.xlu0 %26  }
  0x7e   :  { %29 = vst.msk [vmem:[#allocation0] sm:$0xf] %vm28_vm1, %v27_v6  }
  0x85   :  { %v34_v7 = vld [vmem:[#allocation0] sm:$0xf] }
  0x86   :  { %37 = vst [vmem:[%s71_s1] sm:$0xf] %v34_v7 }

</bundles_post_ra>
